<compile_context>
chip_gen: v7x
topology: tpu7x:2x2x1
jax: 0.10.0
libtpu: 0.0.40
codegen_flags: <defaults>
</compile_context>

<pallas_src>
import functools

import jax
import jax.numpy as jnp
from jax.experimental import pallas as pl
from jax.experimental.pallas import tpu as pltpu

LANE = 128        # vreg lane width: hidden feature dims are zero-padded to this
TARGET_STEPS = 4  # aim for >= 2 (ideally 4) grid steps so v7x's 2 TCs both work


def _round_up(n, m):
    return ((n + m - 1) // m) * m


def _pad_to(a, shape):
    return jnp.pad(a, [(0, s - d) for d, s in zip(a.shape, shape)])


def recognet_kernel(x_ref, w1_ref, w2_ref, w3_ref, w4_ref, b_ref, o_ref):
    """Fused MLP on one batch tile.

    x_ref : (bt, ninput)          f32, streamed per grid step
    w*_ref: (K, 128) zero-padded  bf16, VMEM-resident across grid steps
    b_ref : (4, 128) zero-padded  f32, all four biases in one buffer
    o_ref : (bt, nout_pad)        f32, narrow output block (8x less HBM write)
    """
    b = b_ref[...]

    h = jnp.dot(x_ref[...].astype(jnp.bfloat16), w1_ref[...],
                preferred_element_type=jnp.float32) + b[0:1, :]
    h = jnp.maximum(h, 0.0)
    h = jnp.dot(h.astype(jnp.bfloat16), w2_ref[...],
                preferred_element_type=jnp.float32) + b[1:2, :]
    h = jnp.maximum(h, 0.0)
    h = jnp.dot(h.astype(jnp.bfloat16), w3_ref[...],
                preferred_element_type=jnp.float32) + b[2:3, :]
    h = jnp.maximum(h, 0.0)
    out = jnp.dot(h.astype(jnp.bfloat16), w4_ref[...],
                  preferred_element_type=jnp.float32) + b[3:4, :]

    # Only the first nout_pad lanes are real; the rest are exactly zero anyway.
    o_ref[...] = out[:, : o_ref.shape[1]].astype(o_ref.dtype)


@functools.partial(jax.jit, static_argnames=("block_b",))
def recognet_forward(x, params, block_b=1024):
    """x: (B, ninput) f32. params: w1..w4 (in, out) f32 and b1..b4 (1, out) f32."""
    B, ninput = x.shape
    noutput = params["w4"].shape[1]
    nout_pad = _round_up(noutput, 8)  # e.g. 10 -> 16: 64 B-aligned output rows

    # Lane-dense, zero-padded bf16 weights. Padded weight rows/columns and padded
    # bias lanes are zero, so padded activation lanes stay exactly 0 through ReLU
    # and never leak into real output columns.
    w1 = _pad_to(params["w1"], (ninput, LANE)).astype(jnp.bfloat16)
    w2 = _pad_to(params["w2"], (LANE, LANE)).astype(jnp.bfloat16)
    w3 = _pad_to(params["w3"], (LANE, LANE)).astype(jnp.bfloat16)
    w4 = _pad_to(params["w4"], (LANE, LANE)).astype(jnp.bfloat16)
    biases = jnp.stack(
        [_pad_to(params[f"b{i}"].reshape(-1), (LANE,)) for i in range(1, 5)]
    ).astype(jnp.float32)  # (4, 128): one resident DMA, bias add stays f32

    # Batch tiling: stream x/out tiles over the grid; keep >= TARGET_STEPS steps
    # when B allows it so the "parallel" axis actually shards across TCs on v7x.
    bt = max(8, min(block_b, _round_up(pl.cdiv(B, TARGET_STEPS), 8)))
    B_pad = _round_up(B, bt)
    if B_pad != B:
        x = jnp.pad(x, ((0, B_pad - B), (0, 0)))
    grid = (B_pad // bt,)

    # Scheduling hint derived from the actual padded shapes.
    flops = 2 * B_pad * (ninput * LANE + 3 * LANE * LANE)
    bytes_accessed = (
        4 * B_pad * ninput                      # x read (f32)
        + 4 * B_pad * nout_pad                  # out write (f32, narrow)
        + 2 * (w1.size + w2.size + w3.size + w4.size)  # bf16 weights
        + 4 * biases.size
    )

    out = pl.pallas_call(
        recognet_kernel,
        out_shape=jax.ShapeDtypeStruct((B_pad, nout_pad), jnp.float32),
        grid=grid,
        in_specs=[
            pl.BlockSpec((bt, ninput), lambda i: (i, 0)),    # x: per-tile stream
            pl.BlockSpec((ninput, LANE), lambda i: (0, 0)),  # w1: resident
            pl.BlockSpec((LANE, LANE), lambda i: (0, 0)),    # w2: resident
            pl.BlockSpec((LANE, LANE), lambda i: (0, 0)),    # w3: resident
            pl.BlockSpec((LANE, LANE), lambda i: (0, 0)),    # w4: resident
            pl.BlockSpec((4, LANE), lambda i: (0, 0)),       # packed biases
        ],
        out_specs=pl.BlockSpec((bt, nout_pad), lambda i: (i, 0)),
        compiler_params=pltpu.CompilerParams(
            dimension_semantics=("parallel",),
        ),
        cost_estimate=pl.CostEstimate(
            flops=flops, transcendentals=0, bytes_accessed=bytes_accessed
        ),
    )(x, w1, w2, w3, w4, biases)

    # TODO(synk): consumers that accept the (B_pad, nout_pad) padded layout should
    # take `out` directly and skip this (now cheap, 16-wide) slice pass.
    return out[:B, :noutput]


def init_params(key, ninput, noutput):
    """Deterministic init matching the layer shapes of Recognet.__init__."""
    dims = [(ninput, 40), (40, 20), (20, 20), (20, noutput)]
    params = {}
    for i, (fan_in, fan_out) in enumerate(dims, start=1):
        key, kw, kb = jax.random.split(key, 3)
        bound = 1.0 / jnp.sqrt(fan_in)  # PyTorch default Linear init range
        params[f"w{i}"] = jax.random.uniform(
            kw, (fan_in, fan_out), jnp.float32, -bound, bound)
        params[f"b{i}"] = jax.random.uniform(
            kb, (1, fan_out), jnp.float32, -bound, bound)
    return params


def reference_forward(x, params):
    h = x
    for i in range(1, 4):
        h = jnp.maximum(h @ params[f"w{i}"] + params[f"b{i}"], 0.0)
    return h @ params["w4"] + params["b4"]


if __name__ == "__main__":
    B, NINPUT, NOUTPUT = 8, 32, 10
    key = jax.random.PRNGKey(0)
    key, kx = jax.random.split(key)
    x = jax.random.normal(kx, (B, NINPUT), jnp.float32)
    params = init_params(key, NINPUT, NOUTPUT)

    # Small-batch path (single grid step).
    out = jax.block_until_ready(recognet_forward(x, params))
    ref = reference_forward(x, params)
    assert out.shape == (B, NOUTPUT)
    # bf16 matmul operands (f32 accumulation) -> loosened tolerance vs f32 ref.
    assert jnp.allclose(out, ref, atol=3e-2, rtol=3e-2)

    # Larger, non-multiple batch: exercises the multi-step batch grid + padding.
    key, kx2 = jax.random.split(key)
    x2 = jax.random.normal(kx2, (300, NINPUT), jnp.float32)
    out2 = jax.block_until_ready(recognet_forward(x2, params, block_b=128))
    ref2 = reference_forward(x2, params)
    assert out2.shape == (300, NOUTPUT)
    assert jnp.allclose(out2, ref2, atol=3e-2, rtol=3e-2)

    print("KERNEL_OK")
</pallas_src>

<mosaic_0001>
module attributes {stable_mosaic.version = 11 : i64} {
  func.func @recognet_kernel(%arg0: i32, %arg1: memref<8x32xf32, #tpu.memory_space<vmem>>, %arg2: memref<32x128xbf16, #tpu.memory_space<vmem>>, %arg3: memref<128x128xbf16, #tpu.memory_space<vmem>>, %arg4: memref<128x128xbf16, #tpu.memory_space<vmem>>, %arg5: memref<128x128xbf16, #tpu.memory_space<vmem>>, %arg6: memref<4x128xf32, #tpu.memory_space<vmem>>, %arg7: memref<8x16xf32, #tpu.memory_space<vmem>>) attributes {dimension_semantics = [#tpu.dimension_semantics<parallel>], iteration_bounds = array<i64: 1>, scalar_prefetch = 0 : i64, scratch_operands = 0 : i64, tpu.core_type = #tpu.core_type<tc>, window_params = [{transform_indices = @transform_0, window_bounds = array<i64: 8, 32>}, {pipeline_mode = #tpu.pipeline_mode<synchronous>, transform_indices = @transform_1, window_bounds = array<i64: 32, 128>}, {pipeline_mode = #tpu.pipeline_mode<synchronous>, transform_indices = @transform_2, window_bounds = array<i64: 128, 128>}, {pipeline_mode = #tpu.pipeline_mode<synchronous>, transform_indices = @transform_3, window_bounds = array<i64: 128, 128>}, {pipeline_mode = #tpu.pipeline_mode<synchronous>, transform_indices = @transform_4, window_bounds = array<i64: 128, 128>}, {pipeline_mode = #tpu.pipeline_mode<synchronous>, transform_indices = @transform_5, window_bounds = array<i64: 4, 128>}, {transform_indices = @transform_6, window_bounds = array<i64: 8, 16>}]} {
    %c0 = arith.constant 0 : index
    %c0_0 = arith.constant 0 : index
    %0 = vector.load %arg6[%c0, %c0_0] : memref<4x128xf32, #tpu.memory_space<vmem>>, vector<4x128xf32>
    %c0_1 = arith.constant 0 : index
    %c0_2 = arith.constant 0 : index
    %1 = vector.load %arg1[%c0_1, %c0_2] : memref<8x32xf32, #tpu.memory_space<vmem>>, vector<8x32xf32>
    %2 = arith.truncf %1 : vector<8x32xf32> to vector<8x32xbf16>
    %c0_3 = arith.constant 0 : index
    %c0_4 = arith.constant 0 : index
    %3 = vector.load %arg2[%c0_3, %c0_4] : memref<32x128xbf16, #tpu.memory_space<vmem>>, vector<32x128xbf16>
    %cst = arith.constant dense<0.000000e+00> : vector<8x128xf32>
    %4 = tpu.matmul %2, %3, %cst {dimension_numbers = #tpu.dot_dimension_numbers<[1], [0], [0], [1], [0, 0, 1, 1], [], []>} : vector<8x32xbf16>, vector<32x128xbf16>, vector<8x128xf32> -> vector<8x128xf32>
    %5 = vector.extract_strided_slice %0 {offsets = [0, 0], sizes = [1, 128], strides = [1, 1]} : vector<4x128xf32> to vector<1x128xf32>
    %6 = vector.broadcast %5 : vector<1x128xf32> to vector<8x128xf32>
    %7 = arith.addf %4, %6 : vector<8x128xf32>
    %cst_5 = arith.constant 0.000000e+00 : f32
    %8 = vector.broadcast %cst_5 : f32 to vector<8x128xf32>
    %9 = arith.maximumf %7, %8 : vector<8x128xf32>
    %10 = arith.truncf %9 : vector<8x128xf32> to vector<8x128xbf16>
    %c0_6 = arith.constant 0 : index
    %c0_7 = arith.constant 0 : index
    %11 = vector.load %arg3[%c0_6, %c0_7] : memref<128x128xbf16, #tpu.memory_space<vmem>>, vector<128x128xbf16>
    %cst_8 = arith.constant dense<0.000000e+00> : vector<8x128xf32>
    %12 = tpu.matmul %10, %11, %cst_8 {dimension_numbers = #tpu.dot_dimension_numbers<[1], [0], [0], [1], [0, 0, 1, 1], [], []>} : vector<8x128xbf16>, vector<128x128xbf16>, vector<8x128xf32> -> vector<8x128xf32>
    %13 = vector.extract_strided_slice %0 {offsets = [1, 0], sizes = [1, 128], strides = [1, 1]} : vector<4x128xf32> to vector<1x128xf32>
    %14 = vector.broadcast %13 : vector<1x128xf32> to vector<8x128xf32>
    %15 = arith.addf %12, %14 : vector<8x128xf32>
    %cst_9 = arith.constant 0.000000e+00 : f32
    %16 = vector.broadcast %cst_9 : f32 to vector<8x128xf32>
    %17 = arith.maximumf %15, %16 : vector<8x128xf32>
    %18 = arith.truncf %17 : vector<8x128xf32> to vector<8x128xbf16>
    %c0_10 = arith.constant 0 : index
    %c0_11 = arith.constant 0 : index
    %19 = vector.load %arg4[%c0_10, %c0_11] : memref<128x128xbf16, #tpu.memory_space<vmem>>, vector<128x128xbf16>
    %cst_12 = arith.constant dense<0.000000e+00> : vector<8x128xf32>
    %20 = tpu.matmul %18, %19, %cst_12 {dimension_numbers = #tpu.dot_dimension_numbers<[1], [0], [0], [1], [0, 0, 1, 1], [], []>} : vector<8x128xbf16>, vector<128x128xbf16>, vector<8x128xf32> -> vector<8x128xf32>
    %21 = vector.extract_strided_slice %0 {offsets = [2, 0], sizes = [1, 128], strides = [1, 1]} : vector<4x128xf32> to vector<1x128xf32>
    %22 = vector.broadcast %21 : vector<1x128xf32> to vector<8x128xf32>
    %23 = arith.addf %20, %22 : vector<8x128xf32>
    %cst_13 = arith.constant 0.000000e+00 : f32
    %24 = vector.broadcast %cst_13 : f32 to vector<8x128xf32>
    %25 = arith.maximumf %23, %24 : vector<8x128xf32>
    %26 = arith.truncf %25 : vector<8x128xf32> to vector<8x128xbf16>
    %c0_14 = arith.constant 0 : index
    %c0_15 = arith.constant 0 : index
    %27 = vector.load %arg5[%c0_14, %c0_15] : memref<128x128xbf16, #tpu.memory_space<vmem>>, vector<128x128xbf16>
    %cst_16 = arith.constant dense<0.000000e+00> : vector<8x128xf32>
    %28 = tpu.matmul %26, %27, %cst_16 {dimension_numbers = #tpu.dot_dimension_numbers<[1], [0], [0], [1], [0, 0, 1, 1], [], []>} : vector<8x128xbf16>, vector<128x128xbf16>, vector<8x128xf32> -> vector<8x128xf32>
    %29 = vector.extract_strided_slice %0 {offsets = [3, 0], sizes = [1, 128], strides = [1, 1]} : vector<4x128xf32> to vector<1x128xf32>
    %30 = vector.broadcast %29 : vector<1x128xf32> to vector<8x128xf32>
    %31 = arith.addf %28, %30 : vector<8x128xf32>
    %32 = vector.extract_strided_slice %31 {offsets = [0, 0], sizes = [8, 16], strides = [1, 1]} : vector<8x128xf32> to vector<8x16xf32>
    %c0_17 = arith.constant 0 : index
    %c0_18 = arith.constant 0 : index
    %33 = vector.load %arg7[%c0_17, %c0_18] : memref<8x16xf32, #tpu.memory_space<vmem>>, vector<8x16xf32>
    tpu.vector_store %arg7[%c0_17, %c0_18], %32 {strides = array<i32>} : memref<8x16xf32, #tpu.memory_space<vmem>>, vector<8x16xf32>,
    return
  }
  func.func @transform_0(%arg0: i32) -> (i32, i32) {
    %c0_i32 = arith.constant 0 : i32
    %c0_i32_0 = arith.constant 0 : i32
    return %arg0, %c0_i32 : i32, i32
  }
  func.func @transform_1(%arg0: i32) -> (i32, i32) {
    %c0_i32 = arith.constant 0 : i32
    %c0_i32_0 = arith.constant 0 : i32
    %c0_i32_1 = arith.constant 0 : i32
    return %c0_i32, %c0_i32_0 : i32, i32
  }
  func.func @transform_2(%arg0: i32) -> (i32, i32) {
    %c0_i32 = arith.constant 0 : i32
    %c0_i32_0 = arith.constant 0 : i32
    %c0_i32_1 = arith.constant 0 : i32
    return %c0_i32, %c0_i32_0 : i32, i32
  }
  func.func @transform_3(%arg0: i32) -> (i32, i32) {
    %c0_i32 = arith.constant 0 : i32
    %c0_i32_0 = arith.constant 0 : i32
    %c0_i32_1 = arith.constant 0 : i32
    return %c0_i32, %c0_i32_0 : i32, i32
  }
  func.func @transform_4(%arg0: i32) -> (i32, i32) {
    %c0_i32 = arith.constant 0 : i32
    %c0_i32_0 = arith.constant 0 : i32
    %c0_i32_1 = arith.constant 0 : i32
    return %c0_i32, %c0_i32_0 : i32, i32
  }
  func.func @transform_5(%arg0: i32) -> (i32, i32) {
    %c0_i32 = arith.constant 0 : i32
    %c0_i32_0 = arith.constant 0 : i32
    %c0_i32_1 = arith.constant 0 : i32
    return %c0_i32, %c0_i32_0 : i32, i32
  }
  func.func @transform_6(%arg0: i32) -> (i32, i32) {
    %c0_i32 = arith.constant 0 : i32
    %c0_i32_0 = arith.constant 0 : i32
    return %arg0, %c0_i32 : i32, i32
  }
}

</mosaic_0001>

<bundles_post_ra>
// kernel: recognet_forward.1
= control target key start
LH: loop header
LB: loop body
LE: loop exit
PB: predicated region body
PF: predicated region fallthrough
CT: control target
= control target key end

     0   :  { %v616_v1 = vmov 0.0   ;;  %vm617_vm0 = vmmov 0   ;;  %vm48_vm1 = vcmask 261120   ;;  %s790_s0 = inlined_call_operand.vmem [shape: f32[8,32], index: 0, kind: input, shape index: {}]   ;;  %s791_s1 = inlined_call_operand.vmem [shape: bf16[32,128], index: 1, kind: input, shape index: {}]   ;;  %s792_s2 = inlined_call_operand.vmem [shape: bf16[128,128], index: 2, kind: input, shape index: {}]   ;;  %s793_s3 = inlined_call_operand.vmem [shape: bf16[128,128], index: 3, kind: input, shape index: {}]   ;;  %s794_s4 = inlined_call_operand.vmem [shape: bf16[128,128], index: 4, kind: input, shape index: {}]   ;;  %s795_s5 = inlined_call_operand.vmem [shape: f32[4,128], index: 5, kind: input, shape index: {}]   ;;  %s796_s6 = inlined_call_operand.hbm [shape: f32[8,16], index: 6, kind: output, shape index: {}]  }
   0x1   :  { %v566_v0 = vld [vmem:[%s791_s1] sm:$0xff]   ;;  %495 = vmatprep.subr.bf16.mxu0 %v616_v1  ;;  %v567_v2 = vld [vmem:[%s791_s1 + $0x8] sm:$0xff]   ;;  %503 = vmatprep.subr.bf16.mxu1 %v616_v1  ;;  %v570_v7 = vld [vmem:[%s792_s2 + $0x10] sm:$0xff]  }
   0x2   :  { %496 = vmatpush3.bf16.msra.mxu0 %v566_v0  ;;  %499 = vmatprep.mubr.msk.bf16.mxu0 %vm617_vm0, %v616_v1  ;;  %v26_v3 = vld [vmem:[%s790_s0] sm:$0xff]  ;;  %v569_v6 = vld [vmem:[%s792_s2 + $0x8] sm:$0xff]   ;;  %v571_v8 = vld [vmem:[%s792_s2 + $0x18] sm:$0xff]  }
   0x3   :  { %497 = vmatprep.subr.bf16.mxu0 %v616_v1  ;;  %v568_v4 = vld [vmem:[%s792_s2] sm:$0xff]   ;;  %519 = vmatprep.mubr.msk.bf16.mxu1 %vm617_vm0, %v616_v1  ;;  %v27_v5 = vpack.c.bf16 %v26_v3, %v26_v3 }
   0x4   :  { %504 = vmatpush3.bf16.msra.mxu1 %v568_v4  ;;  %v572_v9 = vld [vmem:[%s792_s2 + $0x20] sm:$0xff]  }
   0x5   :  { %505 = vmatprep.subr.bf16.mxu1 %v616_v1 }
   0x6   :  { %498 = vmatpush3.bf16.msra.mxu0 %v567_v2 }
   0x7   :  { %523 = vmatprep.subr.bf16.mxu0 %v616_v1 }
   0x8   :  { %506 = vmatpush3.bf16.msra.mxu1 %v569_v6 }
   0x9   :  { %500 = vmatmul.mubr.msk.bf16.vlgmr.msra.gmra.mrb[0].mxu0 %vm48_vm1, %v27_v5  ;;  %507 = vmatprep.subr.bf16.mxu1 %v616_v1 }
   0xa   :  { %539 = vmatprep.mubr.msk.bf16.mxu0 %vm617_vm0, %v616_v1 }
   0xc   :  { %508 = vmatpush3.bf16.msra.mxu1 %v570_v7 }
   0xd   :  { %509 = vmatprep.subr.bf16.mxu1 %v616_v1 }
  0x10   :  { %510 = vmatpush3.bf16.msra.mxu1 %v571_v8 }
  0x11   :  { %511 = vmatprep.subr.bf16.mxu1 %v616_v1 }
  0x12   :  { %11 = vsyncpa [#allocation3], 0  ;;  %v573_v10 = vld [vmem:[%s792_s2 + $0x28] sm:$0xff]   ;;  %v574_v11 = vld [vmem:[%s792_s2 + $0x30] sm:$0xff]   ;;  %v32_v19 = vlaneseq  ;;  %s618_s22 = smov [#allocation2]   ;;  %vm422_vm2 = vcmask 130048  }
  0x13   :  { %v575_v12 = vld [vmem:[%s792_s2 + $0x38] sm:$0xff]   ;;  %v576_v13 = vld [vmem:[%s793_s3] sm:$0xff]   ;;  %v577_v14 = vld [vmem:[%s793_s3 + $0x8] sm:$0xff]   ;;  %s430_s2 = sshll.u32 %s618_s22, 4  ;;  %s431_s2 = int_to_ptr.vmem [resolvable:$true] %s430_s2 }
  0x14   :  { %512 = vmatpush3.bf16.msra.mxu1 %v572_v9  ;;  %524 = vmatpush3.bf16.msra.mxu0 %v576_v13  ;;  %v578_v15 = vld [vmem:[%s793_s3 + $0x10] sm:$0xff]   ;;  %v579_v16 = vld [vmem:[%s793_s3 + $0x18] sm:$0xff]   ;;  %v580_v17 = vld [vmem:[%s793_s3 + $0x20] sm:$0xff]   ;;  %v729_v20 = vshrl.u32 %v32_v19, 7  ;;  %p597_p1 = scmp.lt.s32.totalorder %s431_s2, %s431_s2 }
  0x15   :  { %513 = vmatprep.subr.bf16.mxu1 %v616_v1  ;;  %525 = vmatprep.subr.bf16.mxu0 %v616_v1  ;;  %v581_v18 = vld [vmem:[%s793_s3 + $0x28] sm:$0xff]   ;;  %v25_v22 = vld [vmem:[%s795_s5] sm:$0xf]  ;;  %v582_v31 = vld [vmem:[%s793_s3 + $0x30] sm:$0xff]  }
  0x16   :  { %v34_v21 = vsub.s32 0, %v729_v20  ;;  %v583_v32 = vld [vmem:[%s793_s3 + $0x38] sm:$0xff]   ;;  %v584_v33 = vld [vmem:[%s794_s4] sm:$0xff]   ;;  %v585_v34 = vld [vmem:[%s794_s4 + $0x8] sm:$0xff]   ;;  %v112_v39 = vsub.s32 1, %v729_v20  ;;  %v222_v50 = vsub.s32 2, %v729_v20 }
  0x17   :  { %v586_v35 = vld [vmem:[%s794_s4 + $0x10] sm:$0xff]   ;;  %v587_v36 = vld [vmem:[%s794_s4 + $0x18] sm:$0xff]   ;;  %v588_v37 = vld [vmem:[%s794_s4 + $0x20] sm:$0xff]   ;;  %v332_v59 = vsub.s32 3, %v729_v20 }
  0x18   :  { %514 = vmatpush3.bf16.msra.mxu1 %v573_v10  ;;  %526 = vmatpush3.bf16.msra.mxu0 %v577_v14  ;;  %v35_v23 = vrot.slane %v25_v22, %v34_v21  ;;  %v589_v38 = vld [vmem:[%s794_s4 + $0x28] sm:$0xff]   ;;  %v113_v40 = vrot.slane %v25_v22, %v112_v39  ;;  %v590_v48 = vld [vmem:[%s794_s4 + $0x30] sm:$0xff]   ;;  %v591_v49 = vld [vmem:[%s794_s4 + $0x38] sm:$0xff]   ;;  %v223_v51 = vrot.slane %v25_v22, %v222_v50  ;;  %s592_s4 = scalar_lea.vmem %s431_s2, 128 }
  0x19   :  { %515 = vmatprep.subr.bf16.mxu1 %v616_v1  ;;  %527 = vmatprep.subr.bf16.mxu0 %v616_v1  ;;  %v333_v60 = vrot.slane %v25_v22, %v332_v59  ;;  %p593_p0 = scmp.ne.s32.totalorder %s431_s2, %s592_s4  ;;  %p598_p2 = scmp.lt.s32.totalorder %s592_s4, %s592_s4 }
  0x1b   :  { %p599_p3 = por %p598_p2, %p597_p1 }
  0x1c   :  { %516 = vmatpush3.bf16.msra.mxu1 %v574_v11  ;;  %528 = vmatpush3.bf16.msra.mxu0 %v578_v15 }
  0x1d   :  { %517 = vmatprep.subr.bf16.mxu1 %v616_v1  ;;  %529 = vmatprep.subr.bf16.mxu0 %v616_v1  ;;  %p600_p4 = pnand %p599_p3, %p593_p0 }
  0x20   :  { %518 = vmatpush3.bf16.msra.mxu1 %v575_v12  ;;  %530 = vmatpush3.bf16.msra.mxu0 %v579_v16 }
  0x21   :  { %543 = vmatprep.subr.bf16.mxu1 %v616_v1  ;;  %531 = vmatprep.subr.bf16.mxu0 %v616_v1 }
  0x24   :  { %532 = vmatpush3.bf16.msra.mxu0 %v580_v17 }
  0x25   :  { %533 = vmatprep.subr.bf16.mxu0 %v616_v1 }
  0x28   :  { %534 = vmatpush3.bf16.msra.mxu0 %v581_v18 }
  0x29   :  { %535 = vmatprep.subr.bf16.mxu0 %v616_v1 }
  0x2c   :  { %536 = vmatpush3.bf16.msra.mxu0 %v582_v31 }
  0x2d   :  { %537 = vmatprep.subr.bf16.mxu0 %v616_v1 }
  0x30   :  { %538 = vmatpush3.bf16.msra.mxu0 %v583_v32 }
  0xdc   :  { %v86_v24 = vpop.f32.mrb[0].mxu0 }
  0xdd   :  { %v87_v25 = vadd.f32 %v86_v24, %v35_v23  ;;  %v501_v26 = vpop.f32.mrb[1].mxu0 }
  0xde   :  { %v89_v27 = vpop.f32.mrb[2].mxu0 }
  0xdf   :  { %v92_v28 = vmax.f32 %v87_v25, 0.0  ;;  %v502_v29 = vpop.f32.mrb[3].mxu0 }
  0xe1   :  { %v93_v30 = vpack.c.bf16 %v92_v28, %v92_v28 }
  0xe3   :  { %520 = vmatmul.mubr.bf16.vlgmr.msra.gmra.mrb[0].mxu1 %v93_v30 }
  0xe4   :  { %559 = vmatprep.mubr.msk.bf16.mxu1 %vm617_vm0, %v616_v1  ;;  %544 = vmatpush3.bf16.msra.mxu1 %v584_v33 }
  0xe5   :  { %545 = vmatprep.subr.bf16.mxu1 %v616_v1 }
  0xe8   :  { %546 = vmatpush3.bf16.msra.mxu1 %v585_v34 }
  0xe9   :  { %547 = vmatprep.subr.bf16.mxu1 %v616_v1 }
  0xec   :  { %548 = vmatpush3.bf16.msra.mxu1 %v586_v35 }
  0xed   :  { %549 = vmatprep.subr.bf16.mxu1 %v616_v1 }
  0xf0   :  { %550 = vmatpush3.bf16.msra.mxu1 %v587_v36 }
  0xf1   :  { %551 = vmatprep.subr.bf16.mxu1 %v616_v1 }
  0xf4   :  { %552 = vmatpush3.bf16.msra.mxu1 %v588_v37 }
  0xf5   :  { %553 = vmatprep.subr.bf16.mxu1 %v616_v1 }
  0xf8   :  { %554 = vmatpush3.bf16.msra.mxu1 %v589_v38 }
  0xf9   :  { %555 = vmatprep.subr.bf16.mxu1 %v616_v1 }
  0xfc   :  { %556 = vmatpush3.bf16.msra.mxu1 %v590_v48 }
  0xfd   :  { %557 = vmatprep.subr.bf16.mxu1 %v616_v1 }
 0x100   :  { %558 = vmatpush3.bf16.msra.mxu1 %v591_v49 }
 0x1b6   :  { %v196_v41 = vpop.f32.mrb[0].mxu1 }
 0x1b7   :  { %v197_v42 = vadd.f32 %v196_v41, %v113_v40  ;;  %v521_v43 = vpop.f32.mrb[1].mxu1 }
 0x1b8   :  { %v199_v44 = vpop.f32.mrb[2].mxu1 }
 0x1b9   :  { %v202_v45 = vmax.f32 %v197_v42, 0.0  ;;  %v522_v46 = vpop.f32.mrb[3].mxu1 }
 0x1bb   :  { %v203_v47 = vpack.c.bf16 %v202_v45, %v202_v45 }
 0x1bd   :  { %540 = vmatmul.mubr.bf16.vlgmr.msra.gmra.mrb[4].mxu0 %v203_v47 }
 0x290   :  { %v306_v52 = vpop.f32.mrb[4].mxu0 }
 0x291   :  { %v307_v53 = vadd.f32 %v306_v52, %v223_v51  ;;  %v541_v54 = vpop.f32.mrb[5].mxu0 }
 0x292   :  { %v309_v55 = vpop.f32.mrb[6].mxu0 }
 0x293   :  { %v312_v56 = vmax.f32 %v307_v53, 0.0  ;;  %v542_v57 = vpop.f32.mrb[7].mxu0 }
 0x295   :  { %v313_v58 = vpack.c.bf16 %v312_v56, %v312_v56 }
 0x297   :  { %560 = vmatmul.mubr.bf16.vlgmr.msra.gmra.mrb[4].mxu1 %v313_v58 }
 0x36a   :  { %v416_v61 = vpop.f32.mrb[4].mxu1 }
 0x36b   :  { %v417_v62 = vadd.f32 %v416_v61, %v333_v60  ;;  %v561_v63 = vpop.f32.mrb[5].mxu1 }
 0x36c   :  { %v419_v0 = vpop.f32.mrb[6].mxu1 }
 0x36d   :  { %v562_v1 = vpop.f32.mrb[7].mxu1  ;;  %423 = vst.msk [vmem:[#allocation2] sm:$0xff] %vm422_vm2, %v417_v62 }
 0x36e   :  { %603 = shalt.err (!%p600_p4)
}
 0x36f   :  { %s604_s25 = scalar_lea.hbm %s796_s6, 128 }
 0x370   :  { %p605_p5 = scmp.ne.s32.totalorder %s796_s6, %s604_s25  ;;  %p608_p6 = scmp.lt.u32.totalorder %s604_s25, %s796_s6 }
 0x372   :  { %p610_p7 = pnand %p608_p6, %p605_p5 }
 0x374   :  { %613 = shalt.err (!%p610_p7)
}
 0x375   :  { %433 = dma.vmem_to_hbm [thread:$0]  %s431_s2, 128, %s796_s6, [#allocation3]  }
 0x376   :  { %614 = dma.done.wait [#allocation3], 128  }
 0x377   :  { %615 = vsyncadd [#allocation3], 4294967168 }
 0x378   :  { %437 = vsyncpa [#allocation3], 1 }

</bundles_post_ra>
